<compile_context>
chip_gen: v7x
topology: tpu7x:2x2x1
jax: 0.10.0
libtpu: 0.0.40
codegen_flags: <defaults>
</compile_context>

<pallas_src>
import functools

import jax
import jax.numpy as jnp
from jax.experimental import pallas as pl
from jax.experimental.pallas import tpu as pltpu


def _l1bce_kernel(pd_ref, td_ref, op_ref, pp_ref, out_ref, l1_acc, bce_acc,
                  *, scale0, scale1, n_l1, n_bce):
    b = pl.program_id(0)
    j = pl.program_id(1)
    is_first = jnp.logical_and(b == 0, j == 0)
    is_last = jnp.logical_and(b == pl.num_programs(0) - 1,
                              j == pl.num_programs(1) - 1)

    @pl.when(is_first)
    def _():
        l1_acc[...] = jnp.zeros_like(l1_acc)
        bce_acc[...] = jnp.zeros_like(bce_acc)

    # Native-dtype DMA, f32 math on the VPU.
    pd = pd_ref[...].astype(jnp.float32)   # (1, R, T)
    td = td_ref[...].astype(jnp.float32)   # (1, R, T)
    y = op_ref[...].astype(jnp.float32)    # (1, 1, T)
    p = pp_ref[...].astype(jnp.float32)    # (1, 1, T)

    # --- L1 branch: obj prob broadcasts over the ray axis inside the kernel ---
    w_l1 = y * jnp.abs(pd - td)            # (1, R, T)
    l1_acc[...] += jnp.sum(w_l1, axis=1)   # sublane reduce over R -> (1, T)

    # --- BCE branch (PyTorch binary_cross_entropy, log clamped at -100) ---
    log_p = jnp.maximum(jnp.log(p), -100.0)
    log_1mp = jnp.maximum(jnp.log(1.0 - p), -100.0)
    bce = -(y * log_p + (1.0 - y) * log_1mp)   # (1, 1, T)
    bce_acc[...] += bce[:, 0, :]               # (1, T)

    @pl.when(is_last)
    def _():
        l1 = jnp.sum(l1_acc[...]) / n_l1
        bce_mean = jnp.sum(bce_acc[...]) / n_bce
        out_ref[0, 0] = scale0 * l1 + scale1 * bce_mean


def _pick_hw_tile(hw, r, itemsize, target_bytes=2 * 1024 * 1024):
    """Largest lane-dense tile (multiple of 128, divisor of hw) whose distance
    tile stays <= ~2 MiB, so double-buffering fits v7x's smaller VMEM too."""
    if hw % 128 != 0 or r * hw * itemsize <= target_bytes:
        return hw
    best = 128
    for t in range(128, hw + 1, 128):
        if hw % t == 0 and r * t * itemsize <= target_bytes:
            best = t
    return best


def my_l1_bce_loss(prediction, obj_probabilities, target_dists, scale=(1.0, 1.0)):
    """prediction = (pred_dist [B,R,H,W], pred_prob [B,1,H,W]),
    obj_probabilities [B,1,H,W], target_dists [B,R,H,W]."""
    pred_dist, pred_prob = prediction
    B, R, H, W = pred_dist.shape
    assert target_dists.shape == (B, R, H, W)
    assert pred_prob.shape == (B, 1, H, W)
    assert obj_probabilities.shape == (B, 1, H, W)
    HW = H * W

    # Layout glue only (no dtype casts, no broadcast materialization):
    # distance tensors -> (B, R, HW), probability tensors -> (B, 1, HW);
    # spatial axis is lane-dense.
    pd3 = pred_dist.reshape(B, R, HW)
    td3 = target_dists.reshape(B, R, HW)
    op3 = obj_probabilities.reshape(B, 1, HW)
    pp3 = pred_prob.reshape(B, 1, HW)

    itemsize = jnp.dtype(pred_dist.dtype).itemsize
    hw_tile = _pick_hw_tile(HW, R, itemsize)
    n_hw = HW // hw_tile

    kernel = functools.partial(
        _l1bce_kernel,
        scale0=float(scale[0]), scale1=float(scale[1]),
        n_l1=float(B * R * HW), n_bce=float(B * HW),
    )

    dist_spec = pl.BlockSpec((1, R, hw_tile), lambda b, j: (b, 0, j))
    prob_spec = pl.BlockSpec((1, 1, hw_tile), lambda b, j: (b, 0, j))

    bytes_accessed = (2 * B * R * HW + 2 * B * HW) * itemsize + 4
    cost = pl.CostEstimate(
        flops=3 * B * R * HW + 8 * B * HW,
        transcendentals=2 * B * HW,
        bytes_accessed=bytes_accessed,
    )

    out = pl.pallas_call(
        kernel,
        out_shape=jax.ShapeDtypeStruct((1, 1), jnp.float32),
        grid=(B, n_hw),
        in_specs=[dist_spec, dist_spec, prob_spec, prob_spec],
        out_specs=pl.BlockSpec(memory_space=pltpu.SMEM),
        scratch_shapes=[
            pltpu.VMEM((1, hw_tile), jnp.float32),   # l1 per-lane partial sums
            pltpu.VMEM((1, hw_tile), jnp.float32),   # bce per-lane partial sums
        ],
        compiler_params=pltpu.CompilerParams(
            dimension_semantics=("arbitrary", "arbitrary")),
        cost_estimate=cost,
    )(pd3, td3, op3, pp3)
    return out[0, 0]


def _reference(prediction, obj_probabilities, target_dists, scale=(1.0, 1.0)):
    pred_dist, pred_prob = prediction
    l1 = jnp.abs(pred_dist.astype(jnp.float32) - target_dists.astype(jnp.float32))
    l1 = jnp.mean(obj_probabilities.astype(jnp.float32) * l1)
    p = pred_prob.astype(jnp.float32)
    y = obj_probabilities.astype(jnp.float32)
    bce = jnp.mean(-(y * jnp.maximum(jnp.log(p), -100.0)
                     + (1.0 - y) * jnp.maximum(jnp.log(1.0 - p), -100.0)))
    return scale[0] * l1 + scale[1] * bce


if __name__ == "__main__":
    key = jax.random.PRNGKey(0)
    B, R, H, W = 2, 4, 16, 16  # batch, n_rays, spatial
    k1, k2, k3, k4 = jax.random.split(key, 4)

    # Deterministic synthetic inputs consistent with StarDist head outputs.
    pred_dist = jax.nn.softplus(jax.random.normal(k1, (B, R, H, W), jnp.float32))
    target_dists = jax.nn.softplus(jax.random.normal(k2, (B, R, H, W), jnp.float32))
    pred_prob = jax.nn.sigmoid(jax.random.normal(k3, (B, 1, H, W), jnp.float32))
    obj_prob = jax.nn.sigmoid(jax.random.normal(k4, (B, 1, H, W), jnp.float32))

    scale = (1.0, 1.0)
    loss = my_l1_bce_loss((pred_dist, pred_prob), obj_prob, target_dists, scale)
    loss = jax.block_until_ready(loss)

    ref = _reference((pred_dist, pred_prob), obj_prob, target_dists, scale)
    assert jnp.allclose(loss, ref, rtol=1e-5, atol=1e-5), (loss, ref)

    print("KERNEL_OK")
</pallas_src>

<mosaic_0001>
module attributes {stable_mosaic.version = 11 : i64} {
  func.func @_l1bce_kernel(%arg0: i32, %arg1: i32, %arg2: memref<1x4x256xf32, #tpu.memory_space<vmem>>, %arg3: memref<1x4x256xf32, #tpu.memory_space<vmem>>, %arg4: memref<1x1x256xf32, #tpu.memory_space<vmem>>, %arg5: memref<1x1x256xf32, #tpu.memory_space<vmem>>, %arg6: memref<1x1xf32, #tpu.memory_space<smem>>, %arg7: memref<1x256xf32, #tpu.memory_space<vmem>>, %arg8: memref<1x256xf32, #tpu.memory_space<vmem>>) attributes {dimension_semantics = [#tpu.dimension_semantics<arbitrary>, #tpu.dimension_semantics<arbitrary>], iteration_bounds = array<i64: 2, 1>, scalar_prefetch = 0 : i64, scratch_operands = 2 : i64, tpu.core_type = #tpu.core_type<tc>, window_params = [{transform_indices = @transform_0, window_bounds = array<i64: 1, 4, 256>}, {transform_indices = @transform_1, window_bounds = array<i64: 1, 4, 256>}, {transform_indices = @transform_2, window_bounds = array<i64: 1, 1, 256>}, {transform_indices = @transform_3, window_bounds = array<i64: 1, 1, 256>}, {transform_indices = @transform_4, window_bounds = array<i64: 1, 1>}]} {
    %c0_i32 = arith.constant 0 : i32
    %0 = arith.cmpi eq, %arg0, %c0_i32 : i32
    %c0_i32_0 = arith.constant 0 : i32
    %1 = arith.cmpi eq, %arg1, %c0_i32_0 : i32
    %2 = arith.andi %0, %1 : i1
    %c1_i32 = arith.constant 1 : i32
    %3 = arith.cmpi eq, %arg0, %c1_i32 : i32
    %c0_i32_1 = arith.constant 0 : i32
    %4 = arith.cmpi eq, %arg1, %c0_i32_1 : i32
    %5 = arith.andi %3, %4 : i1
    %6 = arith.extui %2 : i1 to i32
    %c0_i32_2 = arith.constant 0 : i32
    %7 = arith.cmpi ne, %6, %c0_i32_2 : i32
    scf.if %7 {
      %cst_28 = arith.constant 0.000000e+00 : f32
      %41 = vector.broadcast %cst_28 : f32 to vector<1x256xf32>
      %c0_29 = arith.constant 0 : index
      %c0_30 = arith.constant 0 : index
      %42 = vector.load %arg7[%c0_29, %c0_30] : memref<1x256xf32, #tpu.memory_space<vmem>>, vector<1x256xf32>
      tpu.vector_store %arg7[%c0_29, %c0_30], %41 {strides = array<i32>} : memref<1x256xf32, #tpu.memory_space<vmem>>, vector<1x256xf32>,
      %cst_31 = arith.constant 0.000000e+00 : f32
      %43 = vector.broadcast %cst_31 : f32 to vector<1x256xf32>
      %c0_32 = arith.constant 0 : index
      %c0_33 = arith.constant 0 : index
      %44 = vector.load %arg8[%c0_32, %c0_33] : memref<1x256xf32, #tpu.memory_space<vmem>>, vector<1x256xf32>
      tpu.vector_store %arg8[%c0_32, %c0_33], %43 {strides = array<i32>} : memref<1x256xf32, #tpu.memory_space<vmem>>, vector<1x256xf32>,
    } else {
    }
    %c0 = arith.constant 0 : index
    %c0_3 = arith.constant 0 : index
    %c0_4 = arith.constant 0 : index
    %8 = vector.load %arg2[%c0, %c0_3, %c0_4] : memref<1x4x256xf32, #tpu.memory_space<vmem>>, vector<1x4x256xf32>
    %c0_5 = arith.constant 0 : index
    %c0_6 = arith.constant 0 : index
    %c0_7 = arith.constant 0 : index
    %9 = vector.load %arg3[%c0_5, %c0_6, %c0_7] : memref<1x4x256xf32, #tpu.memory_space<vmem>>, vector<1x4x256xf32>
    %c0_8 = arith.constant 0 : index
    %c0_9 = arith.constant 0 : index
    %c0_10 = arith.constant 0 : index
    %10 = vector.load %arg4[%c0_8, %c0_9, %c0_10] : memref<1x1x256xf32, #tpu.memory_space<vmem>>, vector<1x1x256xf32>
    %c0_11 = arith.constant 0 : index
    %c0_12 = arith.constant 0 : index
    %c0_13 = arith.constant 0 : index
    %11 = vector.load %arg5[%c0_11, %c0_12, %c0_13] : memref<1x1x256xf32, #tpu.memory_space<vmem>>, vector<1x1x256xf32>
    %12 = arith.subf %8, %9 : vector<1x4x256xf32>
    %13 = math.absf %12 : vector<1x4x256xf32>
    %14 = vector.broadcast %10 : vector<1x1x256xf32> to vector<1x4x256xf32>
    %15 = arith.mulf %14, %13 : vector<1x4x256xf32>
    %c0_14 = arith.constant 0 : index
    %c0_15 = arith.constant 0 : index
    %16 = vector.load %arg7[%c0_14, %c0_15] : memref<1x256xf32, #tpu.memory_space<vmem>>, vector<1x256xf32>
    %cst = arith.constant dense<0.000000e+00> : vector<1x256xf32>
    %17 = vector.multi_reduction <add>, %15, %cst [1] : vector<1x4x256xf32> to vector<1x256xf32>
    %18 = arith.addf %16, %17 : vector<1x256xf32>
    %c0_16 = arith.constant 0 : index
    %c0_17 = arith.constant 0 : index
    %19 = vector.load %arg7[%c0_16, %c0_17] : memref<1x256xf32, #tpu.memory_space<vmem>>, vector<1x256xf32>
    tpu.vector_store %arg7[%c0_16, %c0_17], %18 {strides = array<i32>} : memref<1x256xf32, #tpu.memory_space<vmem>>, vector<1x256xf32>,
    %20 = math.log %11 : vector<1x1x256xf32>
    %cst_18 = arith.constant -1.000000e+02 : f32
    %21 = vector.broadcast %cst_18 : f32 to vector<1x1x256xf32>
    %22 = arith.maximumf %20, %21 : vector<1x1x256xf32>
    %cst_19 = arith.constant 1.000000e+00 : f32
    %23 = vector.broadcast %cst_19 : f32 to vector<1x1x256xf32>
    %24 = arith.subf %23, %11 : vector<1x1x256xf32>
    %25 = math.log %24 : vector<1x1x256xf32>
    %cst_20 = arith.constant -1.000000e+02 : f32
    %26 = vector.broadcast %cst_20 : f32 to vector<1x1x256xf32>
    %27 = arith.maximumf %25, %26 : vector<1x1x256xf32>
    %28 = arith.mulf %10, %22 : vector<1x1x256xf32>
    %cst_21 = arith.constant 1.000000e+00 : f32
    %29 = vector.broadcast %cst_21 : f32 to vector<1x1x256xf32>
    %30 = arith.subf %29, %10 : vector<1x1x256xf32>
    %31 = arith.mulf %30, %27 : vector<1x1x256xf32>
    %32 = arith.addf %28, %31 : vector<1x1x256xf32>
    %cst_22 = arith.constant 0.000000e+00 : f32
    %33 = vector.broadcast %cst_22 : f32 to vector<1x1x256xf32>
    %34 = arith.subf %33, %32 : vector<1x1x256xf32>
    %c0_23 = arith.constant 0 : index
    %c0_24 = arith.constant 0 : index
    %35 = vector.load %arg8[%c0_23, %c0_24] : memref<1x256xf32, #tpu.memory_space<vmem>>, vector<1x256xf32>
    %36 = vector.shape_cast %34 : vector<1x1x256xf32> to vector<1x256xf32>
    %37 = arith.addf %35, %36 : vector<1x256xf32>
    %c0_25 = arith.constant 0 : index
    %c0_26 = arith.constant 0 : index
    %38 = vector.load %arg8[%c0_25, %c0_26] : memref<1x256xf32, #tpu.memory_space<vmem>>, vector<1x256xf32>
    tpu.vector_store %arg8[%c0_25, %c0_26], %37 {strides = array<i32>} : memref<1x256xf32, #tpu.memory_space<vmem>>, vector<1x256xf32>,
    %39 = arith.extui %5 : i1 to i32
    %c0_i32_27 = arith.constant 0 : i32
    %40 = arith.cmpi ne, %39, %c0_i32_27 : i32
    scf.if %40 {
      %c0_28 = arith.constant 0 : index
      %c0_29 = arith.constant 0 : index
      %41 = vector.load %arg7[%c0_28, %c0_29] : memref<1x256xf32, #tpu.memory_space<vmem>>, vector<1x256xf32>
      %42 = vector.shape_cast %41 : vector<1x256xf32> to vector<1x1x256xf32>
      %cst_30 = arith.constant dense<0.000000e+00> : vector<1xf32>
      %43 = vector.multi_reduction <add>, %42, %cst_30 [1, 2] : vector<1x1x256xf32> to vector<1xf32>
      %44 = vector.shape_cast %43 : vector<1xf32> to vector<1x1x1xf32>
      %45 = vector.extract %44[0, 0, 0] : f32 from vector<1x1x1xf32>
      %cst_31 = arith.constant 2.048000e+03 : f32
      %46 = arith.divf %45, %cst_31 : f32
      %c0_32 = arith.constant 0 : index
      %c0_33 = arith.constant 0 : index
      %47 = vector.load %arg8[%c0_32, %c0_33] : memref<1x256xf32, #tpu.memory_space<vmem>>, vector<1x256xf32>
      %48 = vector.shape_cast %47 : vector<1x256xf32> to vector<1x1x256xf32>
      %cst_34 = arith.constant dense<0.000000e+00> : vector<1xf32>
      %49 = vector.multi_reduction <add>, %48, %cst_34 [1, 2] : vector<1x1x256xf32> to vector<1xf32>
      %50 = vector.shape_cast %49 : vector<1xf32> to vector<1x1x1xf32>
      %51 = vector.extract %50[0, 0, 0] : f32 from vector<1x1x1xf32>
      %cst_35 = arith.constant 5.120000e+02 : f32
      %52 = arith.divf %51, %cst_35 : f32
      %cst_36 = arith.constant 1.000000e+00 : f32
      %53 = arith.mulf %cst_36, %46 : f32
      %cst_37 = arith.constant 1.000000e+00 : f32
      %54 = arith.mulf %cst_37, %52 : f32
      %55 = arith.addf %53, %54 : f32
      %c0_38 = arith.constant 0 : index
      %c0_39 = arith.constant 0 : index
      %56 = memref.load %arg6[%c0_38, %c0_39] : memref<1x1xf32, #tpu.memory_space<smem>>
      memref.store %55, %arg6[%c0_38, %c0_39] : memref<1x1xf32, #tpu.memory_space<smem>>
    } else {
    }
    return
  }
  func.func @transform_0(%arg0: i32, %arg1: i32) -> (i32, i32, i32) {
    %c0_i32 = arith.constant 0 : i32
    %c0_i32_0 = arith.constant 0 : i32
    return %arg0, %c0_i32, %arg1 : i32, i32, i32
  }
  func.func @transform_1(%arg0: i32, %arg1: i32) -> (i32, i32, i32) {
    %c0_i32 = arith.constant 0 : i32
    %c0_i32_0 = arith.constant 0 : i32
    return %arg0, %c0_i32, %arg1 : i32, i32, i32
  }
  func.func @transform_2(%arg0: i32, %arg1: i32) -> (i32, i32, i32) {
    %c0_i32 = arith.constant 0 : i32
    %c0_i32_0 = arith.constant 0 : i32
    return %arg0, %c0_i32, %arg1 : i32, i32, i32
  }
  func.func @transform_3(%arg0: i32, %arg1: i32) -> (i32, i32, i32) {
    %c0_i32 = arith.constant 0 : i32
    %c0_i32_0 = arith.constant 0 : i32
    return %arg0, %c0_i32, %arg1 : i32, i32, i32
  }
  func.func @transform_4(%arg0: i32, %arg1: i32) -> (i32, i32) {
    %c0_i32 = arith.constant 0 : i32
    %c0_i32_0 = arith.constant 0 : i32
    %c0_i32_1 = arith.constant 0 : i32
    return %c0_i32, %c0_i32_0 : i32, i32
  }
}

</mosaic_0001>

<bundles_post_ra>
// kernel: tpu_custom_call.1
= control target key start
LH: loop header
LB: loop body
LE: loop exit
PB: predicated region body
PF: predicated region fallthrough
CT: control target
= control target key end

     0   :  { %9 = vsyncpa [#allocation5], 0  ;;  %s1062_s0 = inlined_call_operand.hbm [shape: f32[2,4,256], index: 0, kind: input, shape index: {}]   ;;  %s1063_s1 = inlined_call_operand.hbm [shape: f32[2,4,256], index: 1, kind: input, shape index: {}]   ;;  %s1064_s2 = inlined_call_operand.vmem [shape: f32[2,1,256], index: 2, kind: input, shape index: {}]   ;;  %s1065_s3 = inlined_call_operand.vmem [shape: f32[2,1,256], index: 3, kind: input, shape index: {}]   ;;  %s1066_s4 = inlined_call_operand.hbm [shape: f32[1,1], index: 4, kind: output, shape index: {}]  }
   0x1   :  { %11 = vsyncpa [#allocation5 + $0x1], 0 }
   0x2   :  { %12 = vsyncpa [#allocation8], 0 }
   0x3   :  { %14 = vsyncpa [#allocation8 + $0x1], 0 }
   0x4   :  { %15 = vsyncpa [#allocation6], 0  ;;  %s867_s15 = smov 0   ;;  %s869_s16 = smov 0  }
   0x5   :  { %s871_s17 = smov 0   ;;  %s873_s18 = smov 0  }
   0x6   :  { %s875_s19 = smov 0   ;;  %s877_s20 = smov 0  }
   0x7 LB: > { %s604_s21 = sadd.s32 4294967295, %s835_s20   ;;  %s33_s22 = sadd.s32 1, %s831_s19  ;;  %s835_s20 = sphi %s877_s20, %s21_s20   ;;  %s831_s19 = sphi %s875_s19, %s1080_s19   ;;  %s827_s18 = sphi %s873_s18, %s1079_s18   ;;  %s823_s17 = sphi %s871_s17, %s1078_s17   ;;  %s819_s16 = sphi %s869_s16, %s1077_s16   ;;  %s815_s15 = sphi %s867_s15, %s1076_s15  }
   0x8   : > { %p35_p0 = scmp.ge.s32.totalorder %s33_s22, 2  ;;  %s42_s23 = sadd.s32 1, %s823_s17 }
   0x9   : > { %p49_p1 = scmp.ne.s32.totalorder %s823_s17, %s819_s16  ;;  %p50_p2 = scmp.eq.s32.totalorder %s835_s20, 0 }
   0xa   : > { %s1082_s22 = smov (%p35_p0, %s33_s22), 0  ;;  %p55_p4 = scmp.ne.s32.totalorder %s819_s16, %s815_s15 }
   0xb   : > { %p903_p3 = por %p50_p2, %p49_p1  ;;  %s37_s25 = ssub.s32 %s831_s19, %s1082_s22 }
   0xc   : > { %p56_p5 = scmp.eq.s32.totalorder %s604_s21, 0  ;;  %p40_p6 = scmp.eq.s32.totalorder %s37_s25, 0 }
   0xd   : > { %p647_p8 = scmp.lt.s32.totalorder %s835_s20, 2  ;;  %s921_s28 = sand.u32 1, %s823_s17  }
   0xe   : > { %p912_p7 = por %p56_p5, %p55_p4  ;;  %s624_s29 = sshll.u32 %s831_s19, 7 }
   0xf   : > { %s918_s27 = scalar_select %p40_p6, %s823_s17, %s42_s23  }
  0x10   : > { %s1069_s26 = scalar_select %p912_p7, 1, 0 }
  0x11   : > { %s607_s30 = sshll.u32 %s921_s28, 3  ;;  %s930_s7 = scalar_lea.hbm %s1062_s0, %s624_s29 }
  0x12   : > { %s188_s8 = scalar_lea.vmem [#allocation4], %s607_s30  ;;  %p936_p9 = pnand %p647_p8, %p903_p3 }
  0x13   : > { %s198_s9 = sshll.u32 %s188_s8, 4  ;;  %s185_s11 = scalar_lea.sflag [#allocation5], %s921_s28  ;;  %s940_s9 = int_to_ptr.vmem [resolvable:$true] %s198_s9 }
  0x14   : > { %s705_s12 = scalar_lea.hbm %s930_s7, 128  ;;  %p707_p13 = pneg %p936_p9 }
  0x15   : > { %p706_p12 = scmp.ne.s32.totalorder %s930_s7, %s705_s12  ;;  %s710_s15 = scalar_lea.hbm %s1062_s0, 256 }
  0x16   : > { %p711_p2 = scmp.lt.u32.totalorder %s930_s7, %s1062_s0  ;;  %p712_p3 = scmp.lt.u32.totalorder %s710_s15, %s705_s12 }
  0x17   : > { %p708_p0 = pnand %p707_p13, %p706_p12  ;;  %p714_p5 = scmp.lt.u32.totalorder %s705_s12, %s930_s7 }
  0x18   : > { %p713_p4 = por %p712_p3, %p711_p2 }
  0x19   : > { %p709_p1 = pneg %p708_p0 }
  0x1a   : > { %p715_p6 = por %p714_p5, %p713_p4 }
  0x1c   : > { %p716_p8 = pnand %p715_p6, %p709_p1 }
  0x1e   : > { %719 = shalt.err (!%p716_p8)
}
  0x1f   : > { %s720_s25 = scalar_lea.vmem %s940_s9, 128  ;;  %s837_s5 = smov [#allocation4]  }
  0x20   : > { %p721_p12 = scmp.ne.s32.totalorder %s940_s9, %s720_s25  ;;  %s725_s6 = sshll.u32 %s837_s5, 4  ;;  %s726_s6 = int_to_ptr.vmem [resolvable:$false] %s725_s6 }
  0x21   : > { %s727_s8 = scalar_lea.vmem %s726_s6, 256  ;;  %p728_p11 = scmp.lt.s32.totalorder %s940_s9, %s726_s6 }
  0x22   : > { %p723_p0 = pnand %p721_p12, %p707_p13  ;;  %p729_p2 = scmp.lt.s32.totalorder %s727_s8, %s720_s25 }
  0x24   : > { %p724_p10 = pneg %p723_p0  ;;  %p730_p3 = por %p729_p2, %p728_p11 }
  0x26   : > { %p731_p4 = pnand %p730_p3, %p724_p10 }
  0x28   : > { %734 = shalt.err (!%p731_p4)
}
  0x29   : > { %643 = dma.hbm_to_vmem [thread:$0]  (!%p936_p9), %s930_s7, 128, %s940_s9, %s185_s11  }
  0x2a   : > { %p1071_p1 = scmp.lt.s32.totalorder %s835_s20, 3  ;;  %p1072_p5 = scmp.ge.s32.totalorder %s835_s20, 1 }
  0x2b   : > { %s983_s15 = scalar_lea.hbm %s1063_s1, %s624_s29  ;;  %s209_s23 = scalar_lea.vmem [#allocation7], %s607_s30 }
  0x2c   : > { %p974_p6 = pnand %p1072_p5, %p1071_p1  ;;  %s219_s24 = sshll.u32 %s209_s23, 4  ;;  %s220_s24 = int_to_ptr.vmem [resolvable:$true] %s219_s24 }
  0x2d   : > { %s206_s7 = scalar_lea.sflag [#allocation8], %s921_s28  ;;  %s735_s9 = scalar_lea.hbm %s983_s15, 128 }
  0x2e   : > { %s1073_s12 = scalar_select %p974_p6, 1, 0 }
  0x2f   : > { %p736_p10 = scmp.ne.s32.totalorder %s983_s15, %s735_s9  ;;  %s740_s29 = scalar_lea.hbm %s1063_s1, 256 }
  0x30   : > { %p741_p12 = scmp.lt.u32.totalorder %s983_s15, %s1063_s1  ;;  %p742_p0 = scmp.lt.u32.totalorder %s740_s29, %s735_s9 }
  0x31   : > { %p738_p11 = pnand %p736_p10, %p707_p13  ;;  %p744_p3 = scmp.lt.u32.totalorder %s735_s9, %s983_s15 }
  0x32   : > { %p743_p2 = por %p742_p0, %p741_p12 }
  0x33   : > { %p739_p8 = pneg %p738_p11 }
  0x34   : > { %p745_p4 = por %p744_p3, %p743_p2 }
  0x36   : > { %p746_p1 = pnand %p745_p4, %p739_p8 }
  0x38   : > { %749 = shalt.err (!%p746_p1)
}
  0x39   : > { %s750_s28 = scalar_lea.vmem %s220_s24, 128  ;;  %s838_s30 = smov [#allocation7]  }
  0x3a   : > { %p751_p5 = scmp.ne.s32.totalorder %s220_s24, %s750_s28  ;;  %s755_s8 = sshll.u32 %s838_s30, 4  ;;  %s756_s8 = int_to_ptr.vmem [resolvable:$false] %s755_s8 }
  0x3b   : > { %s757_s13 = scalar_lea.vmem %s756_s8, 256  ;;  %p758_p7 = scmp.lt.s32.totalorder %s220_s24, %s756_s8 }
  0x3c   : > { %p753_p10 = pnand %p751_p5, %p707_p13  ;;  %p759_p6 = scmp.lt.s32.totalorder %s757_s13, %s750_s28 }
  0x3e   : > { %p754_p11 = pneg %p753_p10  ;;  %p760_p0 = por %p759_p6, %p758_p7 }
  0x40   : > { %p761_p12 = pnand %p760_p0, %p754_p11 }
  0x42   : > { %764 = shalt.err (!%p761_p12)
}
  0x43   : > { %646 = dma.hbm_to_vmem [thread:$0]  (!%p936_p9), %s983_s15, 128, %s220_s24, %s206_s7  }
  0x44   : > { %p1074_p8 = scmp.ne.s32.totalorder %s1073_s12, 0 }
  0x45   : > { %s254_s14 = sand.u32 (!%p1074_p8), 1, %s819_s16   ;;  %p1075_p13 = scmp.ne.s32.totalorder (!%p1074_p8), %s1069_s26, 0 }
  0x46   : > { %252 = sbr.rel (%p1074_p8) target bundleno = 362 (0x16a), region = 36  ;;  %s614_s23 = sshll.u32 (!%p1074_p8), %s254_s14, 3 }
  0x47   : > { %s255_s9 = scalar_lea.sflag (!%p1074_p8), [#allocation5], %s254_s14  ;;  %s258_s11 = scalar_lea.vmem (!%p1074_p8), [#allocation4], %s614_s23 }
  0x4d   : > { %802 = dma.done.wait (%p1075_p13), %s255_s9, 128  }
  0x4e   : > { %804 = vsyncadd (%p1075_p13), %s255_s9, 4294967168  ;;  %s264_s25 = scalar_lea.sflag [#allocation8], %s254_s14  ;;  %s267_s29 = scalar_lea.vmem [#allocation7], %s614_s23 }
  0x4f   : > { %806 = dma.done.wait (%p1075_p13), %s264_s25, 128  }
  0x50   : > { %808 = vsyncadd (%p1075_p13), %s264_s25, 4294967168  ;;  %p311_p7 = scmp.lt.s32.totalorder %s827_s18, 1  ;;  %p328_p9 = scmp.eq.s32.totalorder %s827_s18, 0 }
  0x51   : > { %p332_p6 = scmp.eq.s32.totalorder %s827_s18, 1  ;;  %v337_v0 = vlaneseq (%p328_p9)  ;;  %v839_v1 = vmov (%p328_p9), 0.0  }
  0x52   : > { %s312_s10 = scalar_select %p311_p7, %s827_s18, 1 }
  0x53   : > { %336 = sbr.rel (!%p328_p9) target bundleno = 90 (0x5a), region = 48  ;;  %vm339_vm0 = vcmp.lt.s32.totalorder (%p328_p9), %v337_v0, 256 }
  0x54   : > { %s616_s12 = sshll.u32 %s312_s10, 1  ;;  %341 = vst.msk [vmem:[#allocation2] sm:$0x3] (%p328_p9), %vm339_vm0, %v839_v1  ;;  %342 = vst.msk [vmem:[#allocation3] sm:$0x3] (%p328_p9), %vm339_vm0, %v839_v1 }
  0x55   : > { %s317_s7 = scalar_lea.vmem %s1064_s2, %s616_s12  ;;  %s326_s28 = scalar_lea.vmem %s1065_s3, %s616_s12 }
  0x5a PF: > { %v343_v2 = vld [vmem:[%s258_s11] sm:$0xff]  ;;  %v344_v3 = vld [vmem:[%s267_s29] sm:$0xff]  ;;  %v350_v4 = vlaneseq  ;;  %vm366_vm1 = vcmask 1043456   ;;  %v840_v25 = vmov 1966171168   ;;  %vm434_vm3 = vcmask (%p332_p6), 1040384  }
  0x5b   : > { %v347_v5 = vsub.f32 %v343_v2, %v344_v3  ;;  %v346_v6 = vld [vmem:[%s326_s28] sm:$0x3]  ;;  %v385_v26 = vunpack.c.l.s4 %v840_v25  ;;  %v417_v47 = vld [vmem:[#allocation3] sm:$0x3] }
  0x5c   : > { %v351_v7 = vshrl.u32 %v350_v4, 7  ;;  %701 = vlog2.f32 %v346_v6  ;;  %v345_v8 = vld [vmem:[%s317_s7] sm:$0x3]  ;;  %v408_v10 = vsub.f32 1.0, %v346_v6  ;;  %vm402_vm2 = vcmp.lt.s32.totalorder %v350_v4, 256 }
  0x5d   : > { %v348_v9 = vand.u32 2147483647, %v347_v5  ;;  %v413_v33 = vsub.f32 1.0, %v345_v8  ;;  %v386_v36 = vunpack.c.0.s8 %v385_v26  ;;  %v365_v50 = vld [vmem:[#allocation2] sm:$0x3] }
  0x5e   : > { %v352_v11 = vsub.s32 0, %v351_v7  ;;  %v356_v12 = vsub.s32 1, %v351_v7  ;;  %703 = vlog2.f32 %v408_v10 }
  0x5f   : > { %v361_v13 = vcombine.high %v348_v9, %v348_v9  ;;  %v389_v44 = vsub.s32 %v386_v36, %v351_v7 }
  0x60   : > { %v353_v14 = vrot.slane %v345_v8, %v352_v11  ;;  %v357_v15 = vrot.slane %v345_v8, %v356_v12 }
  0x62   : > { %v363_v16 = vmul.f32 %v353_v14, %v348_v9  ;;  %v364_v17 = vmul.f32 %v361_v13, %v357_v15 }
  0x64   : > { %v367_v18 = vsel %vm366_vm1, %v363_v16, 0.0  ;;  %v374_v19 = vsel %vm366_vm1, %v364_v17, 0.0 }
  0x65   : > { %v368_v20 = vrot.slane %v367_v18, 4  ;;  %v375_v21 = vrot.slane %v374_v19, 4 }
  0x66   : > { %v702_v22 = vpop.eup %701 }
  0x67   : > { %v369_v23 = vadd.f32 %v368_v20, %v367_v18  ;;  %v376_v24 = vadd.f32 %v375_v21, %v374_v19  ;;  %v406_v27 = vmul.f32 0.6931472, %v702_v22 }
  0x68   : > { %v704_v28 = vpop.eup %703 }
  0x69   : > { %v370_v29 = vrot.slane %v369_v23, 2  ;;  %v377_v30 = vrot.slane %v376_v24, 2  ;;  %v407_v31 = vmax.f32 %v406_v27, -100.0  ;;  %v410_v32 = vmul.f32 0.6931472, %v704_v28 }
  0x6b   : > { %v371_v34 = vadd.f32 %v370_v29, %v369_v23  ;;  %v378_v35 = vadd.f32 %v377_v30, %v376_v24  ;;  %v411_v37 = vmax.f32 %v410_v32, -100.0  ;;  %v412_v38 = vmul.f32 %v407_v31, %v345_v8 }
  0x6d   : > { %v372_v39 = vrot.slane %v371_v34, 1  ;;  %v379_v40 = vrot.slane %v378_v35, 1  ;;  %v414_v41 = vmul.f32 %v413_v33, %v411_v37 }
  0x6f   : > { %v373_v42 = vadd.f32 %v372_v39, %v371_v34  ;;  %v380_v43 = vadd.f32 %v379_v40, %v378_v35  ;;  %v415_v45 = vadd.f32 %v414_v41, %v412_v38 }
  0x71   : > { %v383_v46 = vcombine.low %v373_v42, %v380_v43  ;;  %v416_v48 = vsub.f32 0.0, %v415_v45 }
  0x73   : > { %v390_v49 = vrot.slane %v383_v46, %v389_v44  ;;  %v418_v51 = vadd.f32 %v417_v47, %v416_v48  ;;  %421 = sbr.rel (!%p332_p6) target bundleno = 347 (0x15b), region = 52 }
  0x75   : > { %v397_v52 = vrot.slane %v390_v49, %v389_v44  ;;  %419 = vst.msk [vmem:[#allocation3] sm:$0x3] %vm402_vm2, %v418_v51 }
  0x77   : > { %v399_v53 = vadd.f32 %v397_v52, %v365_v50 }
  0x79   : > { %404 = vst.msk [vmem:[#allocation2] sm:$0x3] %vm402_vm2, %v399_v53 }
  0x7c   : > { %v450_v55 = vld [vmem:[#allocation3] sm:$0x3] }
  0x7d   : > { %v455_v58 = vrot.slane %v450_v55, %v352_v11  ;;  %v459_v59 = vrot.slane %v450_v55, %v356_v12 }
  0x7f   : > { %v462_v62 = vsel %vm434_vm3, %v455_v58, 0.0  ;;  %v463_v63 = vsel %vm434_vm3, %v459_v59, 0.0 }
  0x80   : > { %v422_v54 = vld [vmem:[#allocation2] sm:$0x3]  ;;  %v464_v1 = vadd.f32 %v463_v63, %v462_v62 }
  0x81   : > { %v427_v56 = vrot.slane %v422_v54, %v352_v11  ;;  %v431_v57 = vrot.slane %v422_v54, %v356_v12 }
  0x83   : > { %v435_v60 = vsel %vm434_vm3, %v427_v56, 0.0  ;;  %v436_v61 = vsel %vm434_vm3, %v431_v57, 0.0 }
  0x84   : > { %v437_v0 = vadd.f32 %v436_v61, %v435_v60 }
  0x86   : > { %438 = vadd.xlane.f32.xlu0 %v437_v0 }
  0x8a   : > { %465 = vadd.xlane.f32.xlu0 %v464_v1 }
 0x113   : > { %v439_v2 = vpop.xlane.xlu0 %438 }
 0x114   : > { %v440_v3 = vrot.slane %v439_v2, 4 }
 0x116   : > { %v441_v4 = vadd.f32 %v440_v3, %v439_v2 }
 0x117   : > { %v466_v5 = vpop.xlane.xlu0 %465 }
 0x118   : > { %v442_v6 = vrot.slane %v441_v4, 2  ;;  %v467_v7 = vrot.slane %v466_v5, 4 }
 0x11a   : > { %v468_v8 = vadd.f32 %v467_v7, %v466_v5  ;;  %v443_v9 = vadd.f32 %v442_v6, %v441_v4 }
 0x11c   : > { %v469_v10 = vrot.slane %v468_v8, 2  ;;  %v444_v13 = vrot.slane %v443_v9, 1 }
 0x11e   : > { %v470_v11 = vadd.f32 %v469_v10, %v468_v8  ;;  %v445_v12 = vadd.f32 %v444_v13, %v443_v9 }
 0x120   : > { %628 = vpush %v445_v12  ;;  %v471_v14 = vrot.slane %v470_v11, 1 }
 0x122   : > { %v472_v15 = vadd.f32 %v471_v14, %v470_v11 }
 0x124   : > { %630 = vpush %v472_v15 }
 0x151   : > { %s629_s18 = spop %628 }
 0x152   : > { %s449_s26 = smul.f32 0.00048828125, %s629_s18 }
 0x155   : > { %s631_s30 = spop %630 }
 0x156   : > { %s476_s8 = smul.f32 0.001953125, %s631_s30 }
 0x158   : > { %s477_s13 = sadd.f32 %s476_s8, %s449_s26 }
 0x15a   : > { %479 = sst [smem:[#allocation9]] %s477_s13 }
 0x15b PF: > { %p648_p2 = scmp.eq.s32.totalorder %s604_s21, 1  ;;  %s765_s9 = scalar_lea.hbm %s1066_s4, 16 }
 0x15c   : > { %p766_p3 = scmp.ne.s32.totalorder %s1066_s4, %s765_s9  ;;  %p771_p5 = scmp.lt.u32.totalorder %s765_s9, %s1066_s4 }
 0x15e   : > { %p767_p4 = pnand %p766_p3, %p648_p2 }
 0x160   : > { %p768_p1 = pneg %p767_p4 }
 0x162   : > { %p773_p10 = pnand %p771_p5, %p768_p1 }
 0x164   : > { %776 = shalt.err (!%p773_p10)
}
 0x165   : > { %s841_s12 = smov [#allocation9]  }
 0x166   : > { %637 = dma.smem_to_hbm (%p648_p2), %s841_s12, 16, %s1066_s4, [#allocation6]  }
 0x167   : > { %810 = dma.done.wait (%p648_p2), [#allocation6], 16  }
 0x168   : > { %812 = vsyncadd (%p648_p2), [#allocation6], 4294967280 }
 0x169   : > { %493 = sfence }
 0x16a PF: > { %s21_s20 = sadd.s32 1, %s835_s20   ;;  %s1076_s15 = smov %s819_s16 }
 0x16b   : > { %p18_p11 = scmp.ge.s32.totalorder %s21_s20, 4   ;;  %s1077_s16 = smov %s823_s17 }
 0x16c   : > { %s1078_s17 = smov %s918_s27  ;;  %s1079_s18 = smov %s831_s19 }
 0x16d   : > { %s1080_s19 = smov %s1082_s22  ;;  %20 = sbr.rel (!%p18_p11) target bundleno = 7 (0x7), region = 101 }
 0x174   :  { %499 = vsyncpa [#allocation5], 1 }
 0x175   :  { %501 = vsyncpa [#allocation5 + $0x1], 1 }
 0x176   :  { %502 = vsyncpa [#allocation8], 1 }
 0x177   :  { %504 = vsyncpa [#allocation8 + $0x1], 1 }
 0x178   :  { %505 = vsyncpa [#allocation6], 1 }
 0x179   :  { %507 = vsyncpa [#allocation6 + $0x1], 1 }

</bundles_post_ra>
